<compile_context>
chip_gen: v6e
topology: v6e:2x2x1
jax: 0.10.0
libtpu: 0.0.40
codegen_flags: <defaults>
</compile_context>

<pallas_src>
import math
import jax
import jax.numpy as jnp
from jax.experimental import pallas as pl
from jax.experimental.pallas import tpu as pltpu


def _gelu_tanh(x):
    # GELU with tanh approximation, matching torch.nn.GELU(approximate='tanh').
    c = math.sqrt(2.0 / math.pi)
    return 0.5 * x * (1.0 + jnp.tanh(c * (x + 0.044715 * x * x * x)))


def _round_up(n, m):
    return ((n + m - 1) // m) * m


def _vmem_capacity_bytes():
    try:
        return int(pltpu.get_tpu_info().vmem_capacity_bytes)
    except Exception:
        return 128 * 1024 * 1024  # v5e/v6e default


def _buffered_spec(block_shape, index_map):
    # Deeper pipelining on streamed weight blocks hides DMA issue latency.
    try:
        return pl.BlockSpec(block_shape, index_map, pipeline_mode=pl.Buffered(3))
    except TypeError:
        return pl.BlockSpec(block_shape, index_map)


# ----------------------------- kernels -------------------------------------


def mlp_kernel_resident(x_ref, wfc_ref, bfc_ref, wproj_ref, bproj_ref, o_ref):
    # Whole MLP for one (tm, C) row tile; W_fc / W_proj are VMEM-resident
    # (constant index maps -> DMA'd once, reused for all M tiles).
    h = jnp.dot(x_ref[...], wfc_ref[...], preferred_element_type=jnp.float32)
    h = _gelu_tanh(h + bfc_ref[...])                       # bias + GELU in f32
    y = jnp.dot(h.astype(wproj_ref.dtype), wproj_ref[...],
                preferred_element_type=jnp.float32)
    o_ref[...] = (y + bproj_ref[...]).astype(o_ref.dtype)


def mlp_kernel_stream(x_ref, wfc_ref, bfc_ref, wproj_ref, bproj_ref, o_ref,
                      acc_ref):
    # Streaming fallback: grid = (M tiles, H tiles); H is the reduction axis.
    # The wrapper guarantees num_programs(1) >= 2.
    h_idx = pl.program_id(1)
    nh = pl.num_programs(1)

    h = jnp.dot(x_ref[...], wfc_ref[...], preferred_element_type=jnp.float32)
    h = _gelu_tanh(h + bfc_ref[...])
    part = jnp.dot(h.astype(wproj_ref.dtype), wproj_ref[...],
                   preferred_element_type=jnp.float32)

    @pl.when(h_idx == 0)
    def _first():                      # no zero-init store; write partial directly
        acc_ref[...] = part

    @pl.when(jnp.logical_and(h_idx > 0, h_idx < nh - 1))
    def _mid():
        acc_ref[...] += part

    @pl.when(h_idx == nh - 1)          # fused finalize: saves a (tm,C) f32 round-trip
    def _last():
        o_ref[...] = (acc_ref[...] + part + bproj_ref[...]).astype(o_ref.dtype)


# ----------------------------- wrapper --------------------------------------


def mlp_pallas(x, w_fc, b_fc, w_proj, b_proj, *, tm=None,
               compute_dtype=jnp.bfloat16):
    """x: (B, T, C). w_fc: (C, 4C). b_fc: (4C,). w_proj: (4C, C). b_proj: (C,)."""
    B, T, C = x.shape
    H = w_fc.shape[1]
    M = B * T
    out_dtype = x.dtype
    out_sz = jnp.dtype(out_dtype).itemsize
    cmp_sz = jnp.dtype(compute_dtype).itemsize

    vmem_cap = _vmem_capacity_bytes()
    # ~102 MiB on v5e/v6e (128 MiB physical), ~51 MiB on v7x (64 MiB per TC).
    vmem_limit = max(32 << 20, min(int(vmem_cap * 0.8), vmem_cap - (8 << 20)))

    # ---------------- M tiling ----------------
    if tm is None:
        tm = 512 if vmem_cap <= (96 << 20) else 768   # v7x smaller, v5e/v6e bigger
    if M >= 256:
        # Keep at least two M tiles so v7x's second TensorCore has work.
        tm = min(tm, _round_up(-(-M // 2), 16))
    tm = max(16, min(tm, _round_up(M, 16)))           # multiple of 16: bf16 packing
    M_pad = _round_up(M, tm)

    # ---------------- resident vs. streaming decision ----------------
    def _resident_bytes(tm_):
        w = 2 * 2 * C * H * cmp_sz            # both weights, assume double-buffered
        xb = 2 * tm_ * C * cmp_sz
        ob = 2 * tm_ * C * out_sz
        inter = 2 * tm_ * H * 4               # f32 GELU intermediate (conservative)
        return w + xb + ob + inter + (2 << 20)

    def _stream_bytes(tm_, th_):
        w = 3 * 2 * C * th_ * cmp_sz          # Buffered(3) weight blocks
        xb = 2 * tm_ * C * cmp_sz
        ob = 2 * tm_ * C * out_sz
        acc = tm_ * C * 4
        inter = 2 * tm_ * th_ * 4
        return w + xb + ob + acc + inter + (2 << 20)

    weights_resident = _resident_bytes(tm) <= vmem_limit
    th = H
    if not weights_resident:
        candidates = [c for c in (2048, 1024, 512, 256, 128) if c < H]
        if not candidates:
            weights_resident = True           # tiny H: resident trivially fits
        else:
            th = next((c for c in candidates if _stream_bytes(tm, c) <= vmem_limit),
                      candidates[-1])

    # ---------------- operand prep ----------------
    x2 = x.reshape(M, C)
    if M_pad != M:
        x2 = jnp.pad(x2, ((0, M_pad - M), (0, 0)))
    x2 = x2.astype(compute_dtype)
    w_fc_c = w_fc.astype(compute_dtype)
    w_proj_c = w_proj.astype(compute_dtype)
    b_fc2 = b_fc.reshape(1, H).astype(jnp.float32)
    b_proj2 = b_proj.reshape(1, C).astype(jnp.float32)

    if weights_resident:
        Hp = H
        grid = (M_pad // tm,)
        in_specs = [
            pl.BlockSpec((tm, C), lambda i: (i, 0)),        # x tile (streamed)
            pl.BlockSpec((C, H), lambda i: (0, 0)),         # W_fc: VMEM-resident
            pl.BlockSpec((1, H), lambda i: (0, 0)),         # b_fc: resident
            pl.BlockSpec((H, C), lambda i: (0, 0)),         # W_proj: resident
            pl.BlockSpec((1, C), lambda i: (0, 0)),         # b_proj: resident
        ]
        out_specs = pl.BlockSpec((tm, C), lambda i: (i, 0))
        scratch_shapes = []
        kernel = mlp_kernel_resident
        semantics = ("parallel",)
        weight_reads = 1
    else:
        Hp = _round_up(H, th)
        if Hp != H:
            # Padded hidden columns contribute exact zeros (GELU(0)=0, zero
            # W_proj rows), so the result is unchanged.
            w_fc_c = jnp.pad(w_fc_c, ((0, 0), (0, Hp - H)))
            b_fc2 = jnp.pad(b_fc2, ((0, 0), (0, Hp - H)))
            w_proj_c = jnp.pad(w_proj_c, ((0, Hp - H), (0, 0)))
        grid = (M_pad // tm, Hp // th)
        in_specs = [
            pl.BlockSpec((tm, C), lambda i, h: (i, 0)),     # x tile
            _buffered_spec((C, th), lambda i, h: (0, h)),   # W_fc column block
            pl.BlockSpec((1, th), lambda i, h: (0, h)),     # b_fc slice
            _buffered_spec((th, C), lambda i, h: (h, 0)),   # W_proj row block
            pl.BlockSpec((1, C), lambda i, h: (0, 0)),      # b_proj
        ]
        out_specs = pl.BlockSpec((tm, C), lambda i, h: (i, 0))
        scratch_shapes = [pltpu.VMEM((tm, C), jnp.float32)]
        kernel = mlp_kernel_stream
        semantics = ("parallel", "arbitrary")
        weight_reads = M_pad // tm            # weights re-streamed per M tile

    # Advisory cost estimate (charges the actual streamed weight traffic).
    flops = 4 * M_pad * C * Hp                # two matmuls
    transcendentals = M_pad * Hp              # tanh per hidden activation
    weight_bytes = int((w_fc_c.size + w_proj_c.size)) * cmp_sz
    bytes_accessed = int(M_pad * C * cmp_sz
                         + weight_reads * weight_bytes
                         + int(b_fc2.size + b_proj2.size) * 4
                         + M_pad * C * out_sz)
    cost = pl.CostEstimate(flops=int(flops),
                           transcendentals=int(transcendentals),
                           bytes_accessed=bytes_accessed)

    out = pl.pallas_call(
        kernel,
        out_shape=jax.ShapeDtypeStruct((M_pad, C), out_dtype),
        grid_spec=pltpu.PrefetchScalarGridSpec(
            num_scalar_prefetch=0,
            grid=grid,
            in_specs=in_specs,
            out_specs=out_specs,
            scratch_shapes=scratch_shapes,
        ),
        compiler_params=pltpu.CompilerParams(
            dimension_semantics=semantics,
            vmem_limit_bytes=int(vmem_limit),
        ),
        cost_estimate=cost,
    )(x2, w_fc_c, b_fc2, w_proj_c, b_proj2)

    if M_pad != M:
        out = out[:M]
    return out.reshape(B, T, C)


def mlp_reference(x, w_fc, b_fc, w_proj, b_proj, compute_dtype=jnp.bfloat16):
    # Reference with the same bf16-matmul / f32-accumulate recipe as the kernel.
    xb = x.astype(compute_dtype)
    h = jnp.einsum("btc,ch->bth", xb, w_fc.astype(compute_dtype),
                   preferred_element_type=jnp.float32) + b_fc.astype(jnp.float32)
    h = _gelu_tanh(h)
    y = jnp.einsum("bth,hc->btc", h.astype(compute_dtype),
                   w_proj.astype(compute_dtype),
                   preferred_element_type=jnp.float32) + b_proj.astype(jnp.float32)
    return y.astype(x.dtype)


if __name__ == "__main__":
    # Small GPT-like config: n_embd=32 -> hidden=128, batch=2, seq=8
    B, T, C = 2, 8, 32
    H = 4 * C

    key = jax.random.PRNGKey(0)
    kx, k1, k2, k3, k4 = jax.random.split(key, 5)

    x = jax.random.normal(kx, (B, T, C), dtype=jnp.float32)
    # PyTorch nn.Linear weights are c_fc (4C, C), c_proj (C, 4C); stored here
    # pre-transposed as (in, out) so the kernel computes x @ W + b.
    w_fc = jax.random.normal(k1, (C, H), dtype=jnp.float32) * 0.02
    b_fc = jax.random.normal(k2, (H,), dtype=jnp.float32) * 0.02
    w_proj = jax.random.normal(k3, (H, C), dtype=jnp.float32) * 0.02
    b_proj = jax.random.normal(k4, (C,), dtype=jnp.float32) * 0.02

    out = jax.block_until_ready(mlp_pallas(x, w_fc, b_fc, w_proj, b_proj))
    ref = mlp_reference(x, w_fc, b_fc, w_proj, b_proj)
    assert out.shape == (B, T, C)
    assert jnp.allclose(out, ref, atol=5e-3, rtol=5e-3), "mismatch vs reference"

    # Multi-tile M path (still weights-resident), ragged M padded then sliced.
    B2, T2 = 2, 40
    x_big = jax.random.normal(kx, (B2, T2, C), dtype=jnp.float32)
    out2 = jax.block_until_ready(
        mlp_pallas(x_big, w_fc, b_fc, w_proj, b_proj, tm=32))
    ref2 = mlp_reference(x_big, w_fc, b_fc, w_proj, b_proj)
    assert out2.shape == (B2, T2, C)
    assert jnp.allclose(out2, ref2, atol=5e-3, rtol=5e-3), \
        "mismatch vs reference (multi-tile)"

    print("KERNEL_OK")
</pallas_src>

<mosaic_0001>
module attributes {stable_mosaic.version = 11 : i64} {
  func.func @mlp_kernel_resident(%arg0: i32, %arg1: memref<16x32xbf16, #tpu.memory_space<vmem>>, %arg2: memref<32x128xbf16, #tpu.memory_space<vmem>>, %arg3: memref<1x128xf32, #tpu.memory_space<vmem>>, %arg4: memref<128x32xbf16, #tpu.memory_space<vmem>>, %arg5: memref<1x32xf32, #tpu.memory_space<vmem>>, %arg6: memref<16x32xf32, #tpu.memory_space<vmem>>) attributes {dimension_semantics = [#tpu.dimension_semantics<parallel>], iteration_bounds = array<i64: 1>, scalar_prefetch = 0 : i64, scratch_operands = 0 : i64, tpu.core_type = #tpu.core_type<tc>, window_params = [{transform_indices = @transform_0, window_bounds = array<i64: 16, 32>}, {pipeline_mode = #tpu.pipeline_mode<synchronous>, transform_indices = @transform_1, window_bounds = array<i64: 32, 128>}, {pipeline_mode = #tpu.pipeline_mode<synchronous>, transform_indices = @transform_2, window_bounds = array<i64: 1, 128>}, {pipeline_mode = #tpu.pipeline_mode<synchronous>, transform_indices = @transform_3, window_bounds = array<i64: 128, 32>}, {pipeline_mode = #tpu.pipeline_mode<synchronous>, transform_indices = @transform_4, window_bounds = array<i64: 1, 32>}, {transform_indices = @transform_5, window_bounds = array<i64: 16, 32>}]} {
    %c0 = arith.constant 0 : index
    %c0_0 = arith.constant 0 : index
    %0 = vector.load %arg1[%c0, %c0_0] : memref<16x32xbf16, #tpu.memory_space<vmem>>, vector<16x32xbf16>
    %c0_1 = arith.constant 0 : index
    %c0_2 = arith.constant 0 : index
    %1 = vector.load %arg2[%c0_1, %c0_2] : memref<32x128xbf16, #tpu.memory_space<vmem>>, vector<32x128xbf16>
    %cst = arith.constant dense<0.000000e+00> : vector<16x128xf32>
    %2 = tpu.matmul %0, %1, %cst {dimension_numbers = #tpu.dot_dimension_numbers<[1], [0], [0], [1], [0, 0, 1, 1], [], []>} : vector<16x32xbf16>, vector<32x128xbf16>, vector<16x128xf32> -> vector<16x128xf32>
    %c0_3 = arith.constant 0 : index
    %c0_4 = arith.constant 0 : index
    %3 = vector.load %arg3[%c0_3, %c0_4] : memref<1x128xf32, #tpu.memory_space<vmem>>, vector<1x128xf32>
    %4 = vector.broadcast %3 : vector<1x128xf32> to vector<16x128xf32>
    %5 = arith.addf %2, %4 : vector<16x128xf32>
    %cst_5 = arith.constant 5.000000e-01 : f32
    %6 = vector.broadcast %cst_5 : f32 to vector<16x128xf32>
    %7 = arith.mulf %6, %5 : vector<16x128xf32>
    %cst_6 = arith.constant 4.471500e-02 : f32
    %8 = vector.broadcast %cst_6 : f32 to vector<16x128xf32>
    %9 = arith.mulf %8, %5 : vector<16x128xf32>
    %10 = arith.mulf %9, %5 : vector<16x128xf32>
    %11 = arith.mulf %10, %5 : vector<16x128xf32>
    %12 = arith.addf %5, %11 : vector<16x128xf32>
    %cst_7 = arith.constant 0.797884583 : f32
    %13 = vector.broadcast %cst_7 : f32 to vector<16x128xf32>
    %14 = arith.mulf %13, %12 : vector<16x128xf32>
    %15 = math.tanh %14 : vector<16x128xf32>
    %cst_8 = arith.constant 1.000000e+00 : f32
    %16 = vector.broadcast %cst_8 : f32 to vector<16x128xf32>
    %17 = arith.addf %16, %15 : vector<16x128xf32>
    %18 = arith.mulf %7, %17 : vector<16x128xf32>
    %19 = arith.truncf %18 : vector<16x128xf32> to vector<16x128xbf16>
    %c0_9 = arith.constant 0 : index
    %c0_10 = arith.constant 0 : index
    %20 = vector.load %arg4[%c0_9, %c0_10] : memref<128x32xbf16, #tpu.memory_space<vmem>>, vector<128x32xbf16>
    %cst_11 = arith.constant dense<0.000000e+00> : vector<16x32xf32>
    %21 = tpu.matmul %19, %20, %cst_11 {dimension_numbers = #tpu.dot_dimension_numbers<[1], [0], [0], [1], [0, 0, 1, 1], [], []>} : vector<16x128xbf16>, vector<128x32xbf16>, vector<16x32xf32> -> vector<16x32xf32>
    %c0_12 = arith.constant 0 : index
    %c0_13 = arith.constant 0 : index
    %22 = vector.load %arg5[%c0_12, %c0_13] : memref<1x32xf32, #tpu.memory_space<vmem>>, vector<1x32xf32>
    %23 = vector.broadcast %22 : vector<1x32xf32> to vector<16x32xf32>
    %24 = arith.addf %21, %23 : vector<16x32xf32>
    %c0_14 = arith.constant 0 : index
    %c0_15 = arith.constant 0 : index
    %25 = vector.load %arg6[%c0_14, %c0_15] : memref<16x32xf32, #tpu.memory_space<vmem>>, vector<16x32xf32>
    tpu.vector_store %arg6[%c0_14, %c0_15], %24 {strides = array<i32>} : memref<16x32xf32, #tpu.memory_space<vmem>>, vector<16x32xf32>,
    return
  }
  func.func @transform_0(%arg0: i32) -> (i32, i32) {
    %c0_i32 = arith.constant 0 : i32
    %c0_i32_0 = arith.constant 0 : i32
    return %arg0, %c0_i32 : i32, i32
  }
  func.func @transform_1(%arg0: i32) -> (i32, i32) {
    %c0_i32 = arith.constant 0 : i32
    %c0_i32_0 = arith.constant 0 : i32
    %c0_i32_1 = arith.constant 0 : i32
    return %c0_i32, %c0_i32_0 : i32, i32
  }
  func.func @transform_2(%arg0: i32) -> (i32, i32) {
    %c0_i32 = arith.constant 0 : i32
    %c0_i32_0 = arith.constant 0 : i32
    %c0_i32_1 = arith.constant 0 : i32
    return %c0_i32, %c0_i32_0 : i32, i32
  }
  func.func @transform_3(%arg0: i32) -> (i32, i32) {
    %c0_i32 = arith.constant 0 : i32
    %c0_i32_0 = arith.constant 0 : i32
    %c0_i32_1 = arith.constant 0 : i32
    return %c0_i32, %c0_i32_0 : i32, i32
  }
  func.func @transform_4(%arg0: i32) -> (i32, i32) {
    %c0_i32 = arith.constant 0 : i32
    %c0_i32_0 = arith.constant 0 : i32
    %c0_i32_1 = arith.constant 0 : i32
    return %c0_i32, %c0_i32_0 : i32, i32
  }
  func.func @transform_5(%arg0: i32) -> (i32, i32) {
    %c0_i32 = arith.constant 0 : i32
    %c0_i32_0 = arith.constant 0 : i32
    return %arg0, %c0_i32 : i32, i32
  }
}

</mosaic_0001>

<bundles_post_ra>
// kernel: tpu_custom_call.1
= control target key start
LH: loop header
LB: loop body
LE: loop exit
PB: predicated region body
PF: predicated region fallthrough
CT: control target
= control target key end

     0   :  { %v342_v1 = vmov 0.0   ;;  %vm343_vm0 = vmmov 0   ;;  %vm52_vm1 = vcmask 261120   ;;  %s422_s0 = inlined_call_operand.vmem [shape: bf16[16,32], index: 0, kind: input, shape index: {}]   ;;  %s423_s1 = inlined_call_operand.vmem [shape: bf16[32,128], index: 1, kind: input, shape index: {}]   ;;  %s424_s2 = inlined_call_operand.vmem [shape: f32[1,128], index: 2, kind: input, shape index: {}]   ;;  %s425_s3 = inlined_call_operand.vmem [shape: bf16[128,32], index: 3, kind: input, shape index: {}]   ;;  %s426_s4 = inlined_call_operand.vmem [shape: f32[1,32], index: 4, kind: input, shape index: {}]   ;;  %s427_s5 = inlined_call_operand.hbm [shape: f32[16,32], index: 5, kind: output, shape index: {}]  }
   0x1   :  { %v305_v0 = vld [vmem:[%s423_s1 + $0x8] sm:$0xff]   ;;  %272 = vmatprep.subr.bf16.mxu0 %v342_v1  ;;  %280 = vmatprep.subr.bf16.mxu1 %v342_v1  ;;  %v306_v2 = vld [vmem:[%s423_s1] sm:$0xff]  }
   0x2   :  { %273 = vmatpush3.bf16.msra.mxu0 %v305_v0  ;;  %276 = vmatprep.mubr.msk.bf16.mxu0 %vm343_vm0, %v342_v1  ;;  %v307_v3 = vld [vmem:[%s422_s0] sm:$0xff]  }
   0x3   :  { %274 = vmatprep.subr.bf16.mxu0 %v342_v1  ;;  %296 = vmatprep.mubr.msk.bf16.mxu1 %vm343_vm0, %v342_v1 }
   0x6   :  { %275 = vmatpush3.bf16.msra.mxu0 %v306_v2 }
   0x7   :  { %10 = vsyncpa [#allocation3], 0  ;;  %v308_v4 = vld [vmem:[%s425_s3 + $0x38] sm:$0xff]   ;;  %v309_v5 = vld [vmem:[%s425_s3 + $0x30] sm:$0xff]   ;;  %s344_s15 = smov [#allocation2]  }
   0x8   :  { %281 = vmatpush3.bf16.msra.mxu1 %v308_v4  ;;  %v310_v6 = vld [vmem:[%s425_s3 + $0x28] sm:$0xff]   ;;  %v311_v7 = vld [vmem:[%s425_s3 + $0x20] sm:$0xff]   ;;  %v312_v8 = vld [vmem:[%s425_s3 + $0x18] sm:$0xff]   ;;  %s235_s16 = sshll.u32 %s344_s15, 4  ;;  %s236_s16 = int_to_ptr.vmem [resolvable:$true] %s235_s16 }
   0x9   :  { %277 = vmatmul.mubr.msk.bf16.vlgmr.msra.gmra.mxu0 %vm52_vm1, %v307_v3  ;;  %282 = vmatprep.subr.bf16.mxu1 %v342_v1  ;;  %v313_v9 = vld [vmem:[%s425_s3 + $0x10] sm:$0xff]   ;;  %v314_v10 = vld [vmem:[%s425_s3 + $0x8] sm:$0xff]   ;;  %v315_v11 = vld [vmem:[%s425_s3] sm:$0xff]   ;;  %s320_s17 = scalar_lea.vmem %s236_s16, 256  ;;  %p325_p1 = scmp.lt.s32.totalorder %s236_s16, %s236_s16 }
   0xa   :  { %v246_v12 = vld [vmem:[%s424_s2] ss:$0 sm:$0xff]  ;;  %p321_p0 = scmp.ne.s32.totalorder %s236_s16, %s320_s17  ;;  %p326_p2 = scmp.lt.s32.totalorder %s320_s17, %s320_s17 }
   0xb   :  { %v251_v38 = vld [vmem:[%s426_s4] ss:$0 sm:$0xff] }
   0xc   :  { %283 = vmatpush3.bf16.msra.mxu1 %v309_v5  ;;  %p327_p3 = por %p326_p2, %p325_p1 }
   0xd   :  { %284 = vmatprep.subr.bf16.mxu1 %v342_v1 }
   0xe   :  { %p328_p4 = pnand %p327_p3, %p321_p0 }
  0x10   :  { %285 = vmatpush3.bf16.msra.mxu1 %v310_v6 }
  0x11   :  { %286 = vmatprep.subr.bf16.mxu1 %v342_v1 }
  0x14   :  { %287 = vmatpush3.bf16.msra.mxu1 %v311_v7 }
  0x15   :  { %288 = vmatprep.subr.bf16.mxu1 %v342_v1 }
  0x18   :  { %289 = vmatpush3.bf16.msra.mxu1 %v312_v8 }
  0x19   :  { %290 = vmatprep.subr.bf16.mxu1 %v342_v1 }
  0x1c   :  { %291 = vmatpush3.bf16.msra.mxu1 %v313_v9 }
  0x1d   :  { %292 = vmatprep.subr.bf16.mxu1 %v342_v1 }
  0x20   :  { %293 = vmatpush3.bf16.msra.mxu1 %v314_v10 }
  0x21   :  { %294 = vmatprep.subr.bf16.mxu1 %v342_v1 }
  0x24   :  { %295 = vmatpush3.bf16.msra.mxu1 %v315_v11 }
  0xc9   :  { %v90_v13 = vpop.f32.mrf.mxu0 }
  0xca   :  { %v91_v14 = vadd.f32 %v246_v12, %v90_v13 }
  0xcb   :  { %v278_v15 = vpop.f32.mrf.mxu0 }
  0xcc   :  { %v99_v16 = vmul.f32 0.044715, %v91_v14  ;;  %v97_v32 = vmul.f32 0.5, %v91_v14 }
  0xcd   :  { %v93_v17 = vpop.f32.mrf.mxu0 }
  0xce   :  { %v101_v18 = vmul.f32 %v99_v16, %v91_v14  ;;  %v94_v19 = vadd.f32 %v246_v12, %v93_v17 }
  0xcf   :  { %v279_v20 = vpop.f32.mrf.mxu0 }
  0xd0   :  { %v103_v21 = vmul.f32 %v101_v18, %v91_v14  ;;  %v100_v22 = vmul.f32 0.044715, %v94_v19  ;;  %v98_v33 = vmul.f32 0.5, %v94_v19 }
  0xd2   :  { %v102_v23 = vmul.f32 %v100_v22, %v94_v19  ;;  %v105_v24 = vadd.f32 %v103_v21, %v91_v14 }
  0xd4   :  { %v104_v25 = vmul.f32 %v102_v23, %v94_v19  ;;  %v107_v26 = vmul.f32 0.7978846, %v105_v24 }
  0xd6   :  { %v106_v27 = vadd.f32 %v104_v25, %v94_v19  ;;  %316 = vtanh.f32 %v107_v26 }
  0xd8   :  { %v108_v28 = vmul.f32 0.7978846, %v106_v27 }
  0xda   :  { %318 = vtanh.f32 %v108_v28 }
  0xe3   :  { %v317_v29 = vpop.eup %316 }
  0xe4   :  { %v111_v30 = vadd.f32 1.0, %v317_v29 }
  0xe6   :  { %v113_v35 = vmul.f32 %v111_v30, %v97_v32 }
  0xe7   :  { %v319_v31 = vpop.eup %318 }
  0xe8   :  { %v112_v34 = vadd.f32 1.0, %v319_v31 }
  0xea   :  { %v114_v36 = vmul.f32 %v112_v34, %v98_v33 }
  0xec   :  { %v115_v37 = vpack.c.bf16 %v114_v36, %v113_v35 }
  0xee   :  { %297 = vmatmul.mubr.bf16.vlgmr.msra.gmra.mxu1 %v115_v37 }
 0x1ae   :  { %v221_v39 = vpop.f32.mrf.mxu1 }
 0x1af   :  { %v222_v40 = vadd.f32 %v251_v38, %v221_v39 }
 0x1b0   :  { %v298_v41 = vpop.f32.mrf.mxu1 }
 0x1b1   :  { %228 = vst.msk [vmem:[#allocation2] sm:$0xff] %vm52_vm1, %v222_v40 }
 0x1b2   :  { %v224_v42 = vpop.f32.mrf.mxu1 }
 0x1b3   :  { %v225_v43 = vadd.f32 %v251_v38, %v224_v42 }
 0x1b4   :  { %v299_v44 = vpop.f32.mrf.mxu1 }
 0x1b5   :  { %229 = vst.msk [vmem:[#allocation2 + $0x8] sm:$0xff] %vm52_vm1, %v225_v43 }
 0x1b6   :  { %331 = shalt.err (!%p328_p4)
}
 0x1b7   :  { %s345_s4 = smov 128   ;;  %s346_s18 = smov 8  }
 0x1b8   :  { %241 = dma.vmem_to_hbm [thread:$0]  %s236_s16, 256, %s427_s5, [#allocation3], %s345_s4, %s345_s4, %s346_s18  }
 0x1b9   :  { %340 = dma.done.wait [#allocation3], 256  }
 0x1ba   :  { %341 = vsyncadd [#allocation3], 4294967040 }
 0x1bb   :  { %245 = vsyncpa [#allocation3], 1 }

</bundles_post_ra>
